<compile_context>
chip_gen: v6e
topology: v6e:2x2x1
jax: 0.10.0
libtpu: 0.0.40
codegen_flags: <defaults>
</compile_context>

<pallas_src>
import functools

import jax
import jax.numpy as jnp
from jax.experimental import pallas as pl
from jax.experimental.pallas import tpu as pltpu

LANE = 128     # TPU lane width (last dim of a vreg)
SUBLANE = 8    # f32 sublane count (second-to-last dim of a vreg)


def _round_up(n, m):
    return ((n + m - 1) // m) * m


def _mlp_kernel(x_ref,
                w1_ref, b1_ref,
                w2_ref, b2_ref,
                w3_ref, b3_ref,
                w4_ref, b4_ref,
                o_ref, *, compute_dtype):
    """One row-block of the 4-layer MLP.  Matmuls on the MXU with f32 accumulation;
    bias-add and tanh in f32 on the VPU/EUP.  All dtype casts happen here (in-kernel),
    so the wrapper never launches separate cast passes over HBM."""
    cdt = compute_dtype

    x = x_ref[...].astype(cdt)

    h = b1_ref[...].astype(jnp.float32) + jnp.dot(
        x, w1_ref[...].astype(cdt), preferred_element_type=jnp.float32)
    h = jnp.tanh(h)

    h = b2_ref[...].astype(jnp.float32) + jnp.dot(
        h.astype(cdt), w2_ref[...].astype(cdt), preferred_element_type=jnp.float32)
    h = jnp.tanh(h)

    h = b3_ref[...].astype(jnp.float32) + jnp.dot(
        h.astype(cdt), w3_ref[...].astype(cdt), preferred_element_type=jnp.float32)
    h = jnp.tanh(h)

    out = b4_ref[...].astype(jnp.float32) + jnp.dot(
        h.astype(cdt), w4_ref[...].astype(cdt), preferred_element_type=jnp.float32)
    o_ref[...] = out.astype(o_ref.dtype)


@functools.partial(jax.jit, static_argnames=("block_rows", "compute_dtype"))
def mlp_regression_forward(x, params, *, block_rows=4096, compute_dtype=jnp.float32):
    """x: (B, input_dim) float32. params: dict of (in, out) weights and (1, out) biases
    (weights stored pre-transposed so y = x @ W + b == PyTorch's x @ W_pt.T + b).

    Returns (B, output_dim) float32, matching the PyTorch module's forward.
    """
    B, in_dim = x.shape
    out_dim = params["w4"].shape[1]

    # Row-tile selection:
    #  * tile rows a multiple of 8 (f32 sublane) unless the tile covers the whole (tiny) batch;
    #  * capped at ceil(B/2) so the grid has >=2 blocks whenever possible (both v7x TCs busy);
    #  * bounded by block_rows; double-buffered x tile at 4096 rows x 16 f32 is ~0.5 MiB, far
    #    under every generation's scoped-VMEM default;
    #  * no padding of x: the ragged last block is handled by Pallas (padded reads, masked writes).
    if B <= SUBLANE:
        tb = B
    else:
        tb = min(block_rows, -(-B // 2))
        tb = max(SUBLANE, _round_up(tb, SUBLANE))
    grid = (pl.cdiv(B, tb),)

    def resident(a):
        # Same block every grid step -> loaded once, stays resident in VMEM.
        return pl.BlockSpec(a.shape, lambda i: (0, 0))

    kernel = functools.partial(_mlp_kernel, compute_dtype=compute_dtype)

    out = pl.pallas_call(
        kernel,
        out_shape=jax.ShapeDtypeStruct((B, out_dim), jnp.float32),
        grid=grid,
        in_specs=[
            pl.BlockSpec((tb, in_dim), lambda i: (i, 0)),   # x: streamed row blocks
            resident(params["w1"]), resident(params["b1"]),
            resident(params["w2"]), resident(params["b2"]),
            resident(params["w3"]), resident(params["b3"]),
            resident(params["w4"]), resident(params["b4"]),
        ],
        out_specs=pl.BlockSpec((tb, out_dim), lambda i: (i, 0)),
        compiler_params=pltpu.CompilerParams(dimension_semantics=("parallel",)),
    )(x,
      params["w1"], params["b1"],
      params["w2"], params["b2"],
      params["w3"], params["b3"],
      params["w4"], params["b4"])

    return out


def init_params(key, input_dim, output_dim, h1, h2, h3):
    """Deterministic PyTorch-style uniform init; weights stored as (in, out)."""
    dims = [(input_dim, h1), (h1, h2), (h2, h3), (h3, output_dim)]
    params = {}
    keys = jax.random.split(key, 2 * len(dims))
    for i, (fin, fout) in enumerate(dims):
        bound = 1.0 / jnp.sqrt(fin)
        w = jax.random.uniform(keys[2 * i], (fin, fout), jnp.float32, -bound, bound)
        b = jax.random.uniform(keys[2 * i + 1], (1, fout), jnp.float32, -bound, bound)
        params[f"w{i+1}"] = w
        params[f"b{i+1}"] = b
    return params


def reference_forward(x, params):
    h = jnp.tanh(x @ params["w1"] + params["b1"])
    h = jnp.tanh(h @ params["w2"] + params["b2"])
    h = jnp.tanh(h @ params["w3"] + params["b3"])
    return h @ params["w4"] + params["b4"]


if __name__ == "__main__":
    key = jax.random.PRNGKey(0)
    k_x, k_p, k_x2 = jax.random.split(key, 3)

    batch, input_dim, output_dim = 8, 16, 4
    h1, h2, h3 = 32, 32, 32

    x = jax.random.normal(k_x, (batch, input_dim), dtype=jnp.float32)
    params = init_params(k_p, input_dim, output_dim, h1, h2, h3)
    ref = reference_forward(x, params)

    # 1) default f32 compute path: exact pipeline check against the JAX reference.
    out_f32 = mlp_regression_forward(x, params)
    out_f32 = jax.block_until_ready(out_f32)
    assert out_f32.shape == (batch, output_dim)
    assert jnp.allclose(out_f32, ref, atol=1e-5, rtol=1e-5), "f32 path mismatch vs reference"

    # 2) optional bf16-operand path (f32 accumulation): loose tolerance per bf16 mantissa.
    out_bf16 = mlp_regression_forward(x, params, compute_dtype=jnp.bfloat16)
    out_bf16 = jax.block_until_ready(out_bf16)
    assert out_bf16.shape == (batch, output_dim)
    assert jnp.allclose(out_bf16, ref, atol=3e-2, rtol=3e-2), "bf16 path mismatch vs reference"

    # 3) multi-block grid with a ragged last block (batch not a multiple of the row tile,
    #    no wrapper-side padding): exact check in f32.
    batch2 = 300
    x2 = jax.random.normal(k_x2, (batch2, input_dim), dtype=jnp.float32)
    ref2 = reference_forward(x2, params)
    out2 = mlp_regression_forward(x2, params, block_rows=128)
    out2 = jax.block_until_ready(out2)
    assert out2.shape == (batch2, output_dim)
    assert jnp.allclose(out2, ref2, atol=1e-5, rtol=1e-5), "ragged/tiled path mismatch"

    print("KERNEL_OK")
</pallas_src>

<mosaic_0001>
module attributes {stable_mosaic.version = 11 : i64} {
  func.func @_mlp_kernel(%arg0: i32, %arg1: memref<8x16xf32, #tpu.memory_space<vmem>>, %arg2: memref<16x32xf32, #tpu.memory_space<vmem>>, %arg3: memref<1x32xf32, #tpu.memory_space<vmem>>, %arg4: memref<32x32xf32, #tpu.memory_space<vmem>>, %arg5: memref<1x32xf32, #tpu.memory_space<vmem>>, %arg6: memref<32x32xf32, #tpu.memory_space<vmem>>, %arg7: memref<1x32xf32, #tpu.memory_space<vmem>>, %arg8: memref<32x4xf32, #tpu.memory_space<vmem>>, %arg9: memref<1x4xf32, #tpu.memory_space<vmem>>, %arg10: memref<8x4xf32, #tpu.memory_space<vmem>>) attributes {dimension_semantics = [#tpu.dimension_semantics<parallel>], iteration_bounds = array<i64: 1>, scalar_prefetch = 0 : i64, scratch_operands = 0 : i64, tpu.core_type = #tpu.core_type<tc>, window_params = [{transform_indices = @transform_0, window_bounds = array<i64: 8, 16>}, {pipeline_mode = #tpu.pipeline_mode<synchronous>, transform_indices = @transform_1, window_bounds = array<i64: 16, 32>}, {pipeline_mode = #tpu.pipeline_mode<synchronous>, transform_indices = @transform_2, window_bounds = array<i64: 1, 32>}, {pipeline_mode = #tpu.pipeline_mode<synchronous>, transform_indices = @transform_3, window_bounds = array<i64: 32, 32>}, {pipeline_mode = #tpu.pipeline_mode<synchronous>, transform_indices = @transform_4, window_bounds = array<i64: 1, 32>}, {pipeline_mode = #tpu.pipeline_mode<synchronous>, transform_indices = @transform_5, window_bounds = array<i64: 32, 32>}, {pipeline_mode = #tpu.pipeline_mode<synchronous>, transform_indices = @transform_6, window_bounds = array<i64: 1, 32>}, {pipeline_mode = #tpu.pipeline_mode<synchronous>, transform_indices = @transform_7, window_bounds = array<i64: 32, 4>}, {pipeline_mode = #tpu.pipeline_mode<synchronous>, transform_indices = @transform_8, window_bounds = array<i64: 1, 4>}, {transform_indices = @transform_9, window_bounds = array<i64: 8, 4>}]} {
    %c0 = arith.constant 0 : index
    %c0_0 = arith.constant 0 : index
    %0 = vector.load %arg1[%c0, %c0_0] : memref<8x16xf32, #tpu.memory_space<vmem>>, vector<8x16xf32>
    %c0_1 = arith.constant 0 : index
    %c0_2 = arith.constant 0 : index
    %1 = vector.load %arg3[%c0_1, %c0_2] : memref<1x32xf32, #tpu.memory_space<vmem>>, vector<1x32xf32>
    %c0_3 = arith.constant 0 : index
    %c0_4 = arith.constant 0 : index
    %2 = vector.load %arg2[%c0_3, %c0_4] : memref<16x32xf32, #tpu.memory_space<vmem>>, vector<16x32xf32>
    %cst = arith.constant dense<0.000000e+00> : vector<8x32xf32>
    %3 = tpu.matmul %0, %2, %cst {dimension_numbers = #tpu.dot_dimension_numbers<[1], [0], [0], [1], [0, 0, 1, 1], [], []>} : vector<8x16xf32>, vector<16x32xf32>, vector<8x32xf32> -> vector<8x32xf32>
    %4 = vector.broadcast %1 : vector<1x32xf32> to vector<8x32xf32>
    %5 = arith.addf %4, %3 : vector<8x32xf32>
    %6 = math.tanh %5 : vector<8x32xf32>
    %c0_5 = arith.constant 0 : index
    %c0_6 = arith.constant 0 : index
    %7 = vector.load %arg5[%c0_5, %c0_6] : memref<1x32xf32, #tpu.memory_space<vmem>>, vector<1x32xf32>
    %c0_7 = arith.constant 0 : index
    %c0_8 = arith.constant 0 : index
    %8 = vector.load %arg4[%c0_7, %c0_8] : memref<32x32xf32, #tpu.memory_space<vmem>>, vector<32x32xf32>
    %cst_9 = arith.constant dense<0.000000e+00> : vector<8x32xf32>
    %9 = tpu.matmul %6, %8, %cst_9 {dimension_numbers = #tpu.dot_dimension_numbers<[1], [0], [0], [1], [0, 0, 1, 1], [], []>} : vector<8x32xf32>, vector<32x32xf32>, vector<8x32xf32> -> vector<8x32xf32>
    %10 = vector.broadcast %7 : vector<1x32xf32> to vector<8x32xf32>
    %11 = arith.addf %10, %9 : vector<8x32xf32>
    %12 = math.tanh %11 : vector<8x32xf32>
    %c0_10 = arith.constant 0 : index
    %c0_11 = arith.constant 0 : index
    %13 = vector.load %arg7[%c0_10, %c0_11] : memref<1x32xf32, #tpu.memory_space<vmem>>, vector<1x32xf32>
    %c0_12 = arith.constant 0 : index
    %c0_13 = arith.constant 0 : index
    %14 = vector.load %arg6[%c0_12, %c0_13] : memref<32x32xf32, #tpu.memory_space<vmem>>, vector<32x32xf32>
    %cst_14 = arith.constant dense<0.000000e+00> : vector<8x32xf32>
    %15 = tpu.matmul %12, %14, %cst_14 {dimension_numbers = #tpu.dot_dimension_numbers<[1], [0], [0], [1], [0, 0, 1, 1], [], []>} : vector<8x32xf32>, vector<32x32xf32>, vector<8x32xf32> -> vector<8x32xf32>
    %16 = vector.broadcast %13 : vector<1x32xf32> to vector<8x32xf32>
    %17 = arith.addf %16, %15 : vector<8x32xf32>
    %18 = math.tanh %17 : vector<8x32xf32>
    %c0_15 = arith.constant 0 : index
    %c0_16 = arith.constant 0 : index
    %19 = vector.load %arg9[%c0_15, %c0_16] : memref<1x4xf32, #tpu.memory_space<vmem>>, vector<1x4xf32>
    %c0_17 = arith.constant 0 : index
    %c0_18 = arith.constant 0 : index
    %20 = vector.load %arg8[%c0_17, %c0_18] : memref<32x4xf32, #tpu.memory_space<vmem>>, vector<32x4xf32>
    %cst_19 = arith.constant dense<0.000000e+00> : vector<8x4xf32>
    %21 = tpu.matmul %18, %20, %cst_19 {dimension_numbers = #tpu.dot_dimension_numbers<[1], [0], [0], [1], [0, 0, 1, 1], [], []>} : vector<8x32xf32>, vector<32x4xf32>, vector<8x4xf32> -> vector<8x4xf32>
    %22 = vector.broadcast %19 : vector<1x4xf32> to vector<8x4xf32>
    %23 = arith.addf %22, %21 : vector<8x4xf32>
    %c0_20 = arith.constant 0 : index
    %c0_21 = arith.constant 0 : index
    %24 = vector.load %arg10[%c0_20, %c0_21] : memref<8x4xf32, #tpu.memory_space<vmem>>, vector<8x4xf32>
    tpu.vector_store %arg10[%c0_20, %c0_21], %23 {strides = array<i32>} : memref<8x4xf32, #tpu.memory_space<vmem>>, vector<8x4xf32>,
    return
  }
  func.func @transform_0(%arg0: i32) -> (i32, i32) {
    %c0_i32 = arith.constant 0 : i32
    %c0_i32_0 = arith.constant 0 : i32
    return %arg0, %c0_i32 : i32, i32
  }
  func.func @transform_1(%arg0: i32) -> (i32, i32) {
    %c0_i32 = arith.constant 0 : i32
    %c0_i32_0 = arith.constant 0 : i32
    %c0_i32_1 = arith.constant 0 : i32
    return %c0_i32, %c0_i32_0 : i32, i32
  }
  func.func @transform_2(%arg0: i32) -> (i32, i32) {
    %c0_i32 = arith.constant 0 : i32
    %c0_i32_0 = arith.constant 0 : i32
    %c0_i32_1 = arith.constant 0 : i32
    return %c0_i32, %c0_i32_0 : i32, i32
  }
  func.func @transform_3(%arg0: i32) -> (i32, i32) {
    %c0_i32 = arith.constant 0 : i32
    %c0_i32_0 = arith.constant 0 : i32
    %c0_i32_1 = arith.constant 0 : i32
    return %c0_i32, %c0_i32_0 : i32, i32
  }
  func.func @transform_4(%arg0: i32) -> (i32, i32) {
    %c0_i32 = arith.constant 0 : i32
    %c0_i32_0 = arith.constant 0 : i32
    %c0_i32_1 = arith.constant 0 : i32
    return %c0_i32, %c0_i32_0 : i32, i32
  }
  func.func @transform_5(%arg0: i32) -> (i32, i32) {
    %c0_i32 = arith.constant 0 : i32
    %c0_i32_0 = arith.constant 0 : i32
    %c0_i32_1 = arith.constant 0 : i32
    return %c0_i32, %c0_i32_0 : i32, i32
  }
  func.func @transform_6(%arg0: i32) -> (i32, i32) {
    %c0_i32 = arith.constant 0 : i32
    %c0_i32_0 = arith.constant 0 : i32
    %c0_i32_1 = arith.constant 0 : i32
    return %c0_i32, %c0_i32_0 : i32, i32
  }
  func.func @transform_7(%arg0: i32) -> (i32, i32) {
    %c0_i32 = arith.constant 0 : i32
    %c0_i32_0 = arith.constant 0 : i32
    %c0_i32_1 = arith.constant 0 : i32
    return %c0_i32, %c0_i32_0 : i32, i32
  }
  func.func @transform_8(%arg0: i32) -> (i32, i32) {
    %c0_i32 = arith.constant 0 : i32
    %c0_i32_0 = arith.constant 0 : i32
    %c0_i32_1 = arith.constant 0 : i32
    return %c0_i32, %c0_i32_0 : i32, i32
  }
  func.func @transform_9(%arg0: i32) -> (i32, i32) {
    %c0_i32 = arith.constant 0 : i32
    %c0_i32_0 = arith.constant 0 : i32
    return %arg0, %c0_i32 : i32, i32
  }
}

</mosaic_0001>

<bundles_post_ra>
// kernel: mlp_regression_forward.1
= control target key start
LH: loop header
LB: loop body
LE: loop exit
PB: predicated region body
PF: predicated region fallthrough
CT: control target
= control target key end

     0   :  { %14 = vsyncpa [#allocation3], 0  ;;  %s663_s0 = inlined_call_operand.vmem [shape: f32[8,16], index: 0, kind: input, shape index: {}]   ;;  %s664_s1 = inlined_call_operand.hbm [shape: f32[16,32], index: 1, kind: input, shape index: {}]   ;;  %s665_s2 = inlined_call_operand.vmem [shape: f32[1,32], index: 2, kind: input, shape index: {}]   ;;  %s666_s3 = inlined_call_operand.vmem [shape: f32[32,32], index: 3, kind: input, shape index: {}]   ;;  %s667_s4 = inlined_call_operand.vmem [shape: f32[1,32], index: 4, kind: input, shape index: {}]   ;;  %s668_s5 = inlined_call_operand.hbm [shape: f32[32,32], index: 5, kind: input, shape index: {}]   ;;  %s669_s6 = inlined_call_operand.vmem [shape: f32[1,32], index: 6, kind: input, shape index: {}]   ;;  %s670_s7 = inlined_call_operand.vmem [shape: f32[32,4], index: 7, kind: input, shape index: {}]   ;;  %s671_s8 = inlined_call_operand.vmem [shape: f32[1,4], index: 8, kind: input, shape index: {}]   ;;  %s672_s9 = inlined_call_operand.vmem [shape: f32[8,4], index: 9, kind: output, shape index: {}]  }
   0x1   :  { %15 = vsyncpa [#allocation5], 0  ;;  %s534_s30 = smov [#allocation2]  }
   0x2   :  { %s23_s10 = sshll.u32 %s534_s30, 4  ;;  %s24_s10 = int_to_ptr.vmem [resolvable:$true] %s23_s10 }
   0x3   :  { %s498_s11 = scalar_lea.vmem %s24_s10, 256  ;;  %p503_p1 = scmp.lt.s32.totalorder %s24_s10, %s24_s10 }
   0x4   :  { %p499_p0 = scmp.ne.s32.totalorder %s24_s10, %s498_s11  ;;  %p504_p2 = scmp.lt.s32.totalorder %s498_s11, %s498_s11 }
   0x6   :  { %p505_p3 = por %p504_p2, %p503_p1 }
   0x8   :  { %p506_p4 = pnand %p505_p3, %p499_p0 }
   0xa   :  { %509 = shalt.err (!%p506_p4)
}
   0xb   :  { %s535_s12 = smov 128   ;;  %s536_s13 = smov 8  }
   0xc   :  { %29 = dma.hbm_to_vmem [thread:$0]  %s664_s1, 256, %s24_s10, [#allocation3], %s535_s12, %s535_s12, %s536_s13  }
   0xd   :  { %s537_s16 = smov [#allocation4]  }
   0xe   :  { %s41_s17 = sshll.u32 %s537_s16, 4  ;;  %s42_s17 = int_to_ptr.vmem [resolvable:$true] %s41_s17 }
   0xf   :  { %s518_s18 = scalar_lea.vmem %s42_s17, 512  ;;  %p523_p6 = scmp.lt.s32.totalorder %s42_s17, %s42_s17 }
  0x10   :  { %p519_p5 = scmp.ne.s32.totalorder %s42_s17, %s518_s18  ;;  %p524_p7 = scmp.lt.s32.totalorder %s518_s18, %s518_s18 }
  0x12   :  { %p525_p8 = por %p524_p7, %p523_p6 }
  0x14   :  { %p526_p9 = pnand %p525_p8, %p519_p5 }
  0x16   :  { %529 = shalt.err (!%p526_p9)
}
  0x17   :  { %47 = dma.hbm_to_vmem [thread:$0]  %s668_s5, 512, %s42_s17, [#allocation5], %s535_s12, %s535_s12, %s536_s13  }
  0x18   :  { %530 = dma.done.wait [#allocation3], 256  }
  0x19   :  { %531 = vsyncadd [#allocation3], 4294967040 }
  0x1a   :  { %532 = dma.done.wait [#allocation5], 512  }
  0x1b   :  { %533 = vsyncadd [#allocation5], 4294966784  ;;  %v538_v0 = vmov 0.0   ;;  %vm539_vm0 = vmmov 0   ;;  %v63_v1 = vld [vmem:[#allocation2 + $0x8] sm:$0xff]  ;;  %v62_v2 = vld [vmem:[#allocation2] sm:$0xff] }
  0x1c   :  { %438 = vmatprep.subr.mxu0 %v538_v0  ;;  %442 = vmatprep.mubr.msk.f32.mxu0 %vm539_vm0, %v538_v0  ;;  %v60_v3 = vld [vmem:[%s663_s0] sm:$0xff]  ;;  %vm64_vm1 = vcmask 130048   ;;  %v150_v4 = vld [vmem:[%s666_s3 + $0x18] sm:$0xff]  ;;  %v149_v5 = vld [vmem:[%s666_s3 + $0x10] sm:$0xff]  ;;  %vm151_vm2 = vcmask 261120   ;;  %vm404_vm3 = vcmask 31744  }
  0x1d   :  { %445 = vmatprep.subr.mxu1 %v538_v0  ;;  %453 = vmatprep.mubr.msk.f32.mxu1 %vm539_vm0, %v538_v0  ;;  %v148_v6 = vld [vmem:[%s666_s3 + $0x8] sm:$0xff]  ;;  %v147_v7 = vld [vmem:[%s666_s3] sm:$0xff]  ;;  %v235_v15 = vld [vmem:[#allocation4 + $0x8] sm:$0xff] }
  0x1e   :  { %439 = vmatpush3.msra.mxu0 %v63_v1  ;;  %446 = vmatpush3.msra.mxu1 %v150_v4  ;;  %v413_v8 = vld [vmem:[%s665_s2] ss:$0 sm:$0xff]  ;;  %v237_v13 = vld [vmem:[#allocation4 + $0x18] sm:$0xff]  ;;  %v234_v16 = vld [vmem:[#allocation4] sm:$0xff] }
  0x1f   :  { %440 = vmatprep.subr.mxu0 %v538_v0  ;;  %447 = vmatprep.subr.mxu1 %v538_v0  ;;  %v236_v14 = vld [vmem:[#allocation4 + $0x10] sm:$0xff]  ;;  %v323_v22 = vld [vmem:[%s670_s7 + $0x18] sm:$0xff]  ;;  %v322_v23 = vld [vmem:[%s670_s7 + $0x10] sm:$0xff] }
  0x20   :  { %441 = vmatpush3.msra.mxu0 %v62_v2  ;;  %448 = vmatpush3.msra.mxu1 %v149_v5  ;;  %v415_v17 = vld [vmem:[%s667_s4] ss:$0 sm:$0xff]  ;;  %v321_v24 = vld [vmem:[%s670_s7 + $0x8] sm:$0xff] }
  0x21   :  { %443 = vmatmul.mubr.msk.f32.vlgmr.msra.gmra.mxu0 %vm64_vm1, %v60_v3  ;;  %456 = vmatprep.subr.mxu0 %v538_v0  ;;  %v320_v25 = vld [vmem:[%s670_s7] sm:$0xff] }
  0x22   :  { %464 = vmatprep.mubr.msk.f32.mxu0 %vm539_vm0, %v538_v0  ;;  %449 = vmatprep.subr.mxu1 %v538_v0  ;;  %v417_v26 = vld [vmem:[%s669_s6] ss:$0 sm:$0xff] }
  0x23   :  { %450 = vmatpush3.msra.mxu1 %v148_v6  ;;  %457 = vmatpush3.msra.mxu0 %v237_v13  ;;  %v419_v31 = vld [vmem:[%s671_s8] ss:$0 sm:$0xff] }
  0x24   :  { %451 = vmatprep.subr.mxu1 %v538_v0  ;;  %458 = vmatprep.subr.mxu0 %v538_v0 }
  0x25   :  { %452 = vmatpush3.msra.mxu1 %v147_v7  ;;  %459 = vmatpush3.msra.mxu0 %v236_v14 }
  0x26   :  { %467 = vmatprep.subr.mxu1 %v538_v0  ;;  %460 = vmatprep.subr.mxu0 %v538_v0 }
  0x27   :  { %461 = vmatpush3.msra.mxu0 %v235_v15 }
  0x28   :  { %462 = vmatprep.subr.mxu0 %v538_v0 }
  0x29   :  { %463 = vmatpush3.msra.mxu0 %v234_v16 }
  0xe1   :  { %v134_v9 = vpop.f32.mrf.mxu0 }
  0xe2   :  { %v144_v10 = vadd.f32 %v413_v8, %v134_v9 }
  0xe3   :  { %v444_v11 = vpop.f32.mrf.mxu0 }
  0xe4   :  { %484 = vtanh.f32 %v144_v10 }
  0xf1   :  { %v485_v12 = vpop.eup %484 }
  0xf2   :  { %454 = vmatmul.mubr.msk.f32.vlgmr.msra.gmra.mxu1 %vm151_vm2, %v485_v12 }
  0xf3   :  { %475 = vmatprep.mubr.msk.f32.mxu1 %vm539_vm0, %v538_v0  ;;  %468 = vmatpush3.msra.mxu1 %v323_v22 }
  0xf4   :  { %469 = vmatprep.subr.mxu1 %v538_v0 }
  0xf5   :  { %470 = vmatpush3.msra.mxu1 %v322_v23 }
  0xf6   :  { %471 = vmatprep.subr.mxu1 %v538_v0 }
  0xf7   :  { %472 = vmatpush3.msra.mxu1 %v321_v24 }
  0xf8   :  { %473 = vmatprep.subr.mxu1 %v538_v0 }
  0xf9   :  { %474 = vmatpush3.msra.mxu1 %v320_v25 }
 0x1b2   :  { %v221_v18 = vpop.f32.mrf.mxu1 }
 0x1b3   :  { %v231_v19 = vadd.f32 %v415_v17, %v221_v18 }
 0x1b4   :  { %v455_v20 = vpop.f32.mrf.mxu1 }
 0x1b5   :  { %486 = vtanh.f32 %v231_v19 }
 0x1c2   :  { %v487_v21 = vpop.eup %486 }
 0x1c3   :  { %465 = vmatmul.mubr.msk.f32.vlgmr.msra.gmra.mxu0 %vm151_vm2, %v487_v21 }
 0x283   :  { %v307_v27 = vpop.f32.mrf.mxu0 }
 0x284   :  { %v317_v28 = vadd.f32 %v417_v26, %v307_v27 }
 0x285   :  { %v466_v29 = vpop.f32.mrf.mxu0 }
 0x286   :  { %488 = vtanh.f32 %v317_v28 }
 0x293   :  { %v489_v30 = vpop.eup %488 }
 0x294   :  { %476 = vmatmul.mubr.msk.f32.vlgmr.msra.gmra.mxu1 %vm151_vm2, %v489_v30 }
 0x354   :  { %v393_v32 = vpop.f32.mrf.mxu1 }
 0x355   :  { %v403_v33 = vadd.f32 %v419_v31, %v393_v32 }
 0x356   :  { %v477_v34 = vpop.f32.mrf.mxu1 }
 0x357   :  { %405 = vst.msk [vmem:[%s672_s9] sm:$0xff] %vm404_vm3, %v403_v33 }
 0x358   :  { %410 = vsyncpa [#allocation3], 1 }
 0x359   :  { %411 = vsyncpa [#allocation5], 1 }

</bundles_post_ra>
